<compile_context>
chip_gen: v7x
topology: tpu7x:2x2x1
jax: 0.10.0
libtpu: 0.0.40
codegen_flags: <defaults>
</compile_context>

<pallas_src>
import functools

import jax
import jax.numpy as jnp
from jax.experimental import pallas as pl
from jax.experimental.pallas import tpu as pltpu


_MIB = 1024 * 1024


def _vmem_limit_bytes():
    """Generation-aware scoped-VMEM limit (v5e/v6e: 128 MiB phys, v7x: 64 MiB)."""
    try:
        cap = int(getattr(pltpu.get_tpu_info(), "vmem_capacity_bytes", 64 * _MIB))
    except Exception:
        cap = 64 * _MIB
    return int(min(max(cap - 16 * _MIB, 32 * _MIB), 100 * _MIB))


_VMEM_LIMIT = _vmem_limit_bytes()


def _pick_tile(dim, candidates):
    """Largest candidate that evenly divides `dim`, else the full dim."""
    for c in candidates:
        if dim >= c and dim % c == 0:
            return c
    return dim


# ----------------------------------------------------------------------------
# Kernel 1: tiled dense layer   y = x @ W.T + b     (W stored PyTorch-style)
#   x: [M, K]   w: [N, K]   b: [1, N]   y: [M, N]
#   grid = (M/tm, N/tn, K/tk); K is the (last, "arbitrary") reduction axis,
#   accumulated in a VMEM f32 scratch, bias added at the final K step.
# ----------------------------------------------------------------------------
def _linear_kernel(x_ref, w_ref, b_ref, o_ref, acc_ref, *, mxu_dtype):
    @pl.when(pl.program_id(2) == 0)
    def _():
        acc_ref[...] = jnp.zeros_like(acc_ref)

    # Contract x[.,K] against w[.,K] (weights consumed in stored layout).
    acc_ref[...] += jax.lax.dot_general(
        x_ref[...].astype(mxu_dtype), w_ref[...].astype(mxu_dtype),
        dimension_numbers=(((1,), (1,)), ((), ())),
        preferred_element_type=jnp.float32,
    )

    @pl.when(pl.program_id(2) == pl.num_programs(2) - 1)
    def _():
        o_ref[...] = acc_ref[...] + b_ref[...]


def linear(x2d, w, b, *, fast_math=False):
    """x2d: [M, K] f32, w: [N, K] f32 (PyTorch layout), b: [N] f32 -> [M, N]."""
    M, K = x2d.shape
    N = w.shape[0]
    tm = _pick_tile(M, (512, 256, 128, 64, 32, 16, 8))
    tn = _pick_tile(N, (512, 256, 128))
    tk = _pick_tile(K, (512, 256, 128))

    kernel = functools.partial(
        _linear_kernel, mxu_dtype=jnp.bfloat16 if fast_math else jnp.float32
    )
    return pl.pallas_call(
        kernel,
        out_shape=jax.ShapeDtypeStruct((M, N), jnp.float32),
        grid_spec=pltpu.PrefetchScalarGridSpec(
            num_scalar_prefetch=0,
            grid=(M // tm, N // tn, K // tk),
            in_specs=[
                pl.BlockSpec((tm, tk), lambda i, j, kk: (i, kk)),
                pl.BlockSpec((tn, tk), lambda i, j, kk: (j, kk)),
                pl.BlockSpec((1, tn), lambda i, j, kk: (0, j)),
            ],
            out_specs=pl.BlockSpec((tm, tn), lambda i, j, kk: (i, j)),
            scratch_shapes=[pltpu.VMEM((tm, tn), jnp.float32)],
        ),
        compiler_params=pltpu.CompilerParams(
            dimension_semantics=("parallel", "parallel", "arbitrary"),
            vmem_limit_bytes=_VMEM_LIMIT,
        ),
    )(x2d, w, b.reshape(1, N))


# ----------------------------------------------------------------------------
# Kernel 2: scaled-dot-product attention over merged-head activations, with
#           the output projection fused into the epilogue.
#   Grid = (B, Sq/tq); each step handles ALL heads of one (batch, Sq-tile).
#   q:    [1, tq, H*D]     k, v: [1, Sk, H*D]
#   mask: [1, tq, Sk] int8 (skipped when causal — generated in-kernel via iota)
#   w_o:  [hid, H*D]       b_o:  [1, hid]
#   out:  [1, tq, hid]     prob (head 0 only): [1, tq, Sk]
# ----------------------------------------------------------------------------
def _attention_kernel(*refs, n_heads, head_dim, causal, fast_math):
    if causal:
        q_ref, k_ref, v_ref, w_o_ref, b_o_ref, out_ref, prob_ref = refs
        mask_ref = None
    else:
        q_ref, k_ref, v_ref, mask_ref, w_o_ref, b_o_ref, out_ref, prob_ref = refs

    tq = q_ref.shape[1]
    sk = k_ref.shape[1]
    neg = jnp.float32(-1e9)
    mxu_dtype = jnp.bfloat16 if fast_math else jnp.float32

    if causal:
        # In-kernel mask: no B*Sq*Sk HBM read; iota+cmp are VPU filler.
        q_start = pl.program_id(1) * tq
        rows = q_start + jax.lax.broadcasted_iota(jnp.int32, (tq, sk), 0)
        cols = jax.lax.broadcasted_iota(jnp.int32, (tq, sk), 1)
        masked = cols > rows
    else:
        masked = mask_ref[0] != 0                     # (tq, Sk) bool

    ctx_parts = []
    prob0 = None
    for h in range(n_heads):                          # static unroll over heads
        lo = h * head_dim
        hi = lo + head_dim
        qh = q_ref[0, :, lo:hi].astype(mxu_dtype)     # (tq, D)  (scale folded in W_Q)
        kh = k_ref[0, :, lo:hi].astype(mxu_dtype)     # (Sk, D)
        vh = v_ref[0, :, lo:hi].astype(mxu_dtype)     # (Sk, D)

        # q @ k^T without materializing a transpose of k.
        scores = jax.lax.dot_general(
            qh, kh,
            dimension_numbers=(((1,), (1,)), ((), ())),
            preferred_element_type=jnp.float32,
        )                                             # (tq, Sk)
        scores = jnp.where(masked, neg, scores)

        m = jnp.max(scores, axis=-1, keepdims=True)
        e = jnp.exp(scores - m)
        p = e * pl.reciprocal(jnp.sum(e, axis=-1, keepdims=True), approx=fast_math)

        ctx_parts.append(
            jax.lax.dot_general(
                p.astype(mxu_dtype), vh,
                dimension_numbers=(((1,), (0,)), ((), ())),
                preferred_element_type=jnp.float32,
            )                                         # (tq, D)
        )
        if h == 0:
            prob0 = p                                 # only head 0 is consumed

    prob_ref[0] = prob0

    # One lane-dense (tq, H*D) value — no per-head masked partial stores.
    ctx = jnp.concatenate(ctx_parts, axis=-1)

    # Fused output projection: out = ctx @ W_O.T + b_O (W_O stored (hid, H*D)).
    # TODO(synk): tile this matmul when hid*H*D weights exceed the VMEM budget.
    out = jax.lax.dot_general(
        ctx.astype(mxu_dtype), w_o_ref[...].astype(mxu_dtype),
        dimension_numbers=(((1,), (1,)), ((), ())),
        preferred_element_type=jnp.float32,
    ) + b_o_ref[...]
    out_ref[0] = out


def attention_with_out_proj(q_p, k_p, v_p, mask_i8, w_o, b_o,
                            *, n_heads, head_dim, causal, fast_math):
    """q_p: [B,Sq,H*D], k_p/v_p: [B,Sk,H*D], mask_i8: [B,Sq,Sk] int8 or None."""
    B, Sq, HD = q_p.shape
    Sk = k_p.shape[1]
    hid = w_o.shape[0]
    # tq capped at 256: the per-head scores/p temporaries are tq*Sk f32 live
    # values inside a fully unrolled head loop (vreg-spill control).
    tq = _pick_tile(Sq, (256, 128, 64, 32, 16, 8))

    # TODO(synk): flash-style Sk tiling (online softmax) to bound K/V VMEM on
    # v7x (64 MiB) at long sequences; full-Sk residency kept because the module
    # returns the full [Sq, Sk] head-0 probability matrix.
    kernel = functools.partial(
        _attention_kernel, n_heads=n_heads, head_dim=head_dim,
        causal=causal, fast_math=fast_math,
    )

    in_specs = [
        pl.BlockSpec((1, tq, HD), lambda b, i: (b, i, 0)),
        pl.BlockSpec((1, Sk, HD), lambda b, i: (b, 0, 0)),
        pl.BlockSpec((1, Sk, HD), lambda b, i: (b, 0, 0)),
    ]
    inputs = [q_p, k_p, v_p]
    if not causal:
        in_specs.append(pl.BlockSpec((1, tq, Sk), lambda b, i: (b, i, 0)))
        inputs.append(mask_i8)
    in_specs += [
        pl.BlockSpec((hid, HD), lambda b, i: (0, 0)),
        pl.BlockSpec((1, hid), lambda b, i: (0, 0)),
    ]
    inputs += [w_o, b_o.reshape(1, hid)]

    out, prob0 = pl.pallas_call(
        kernel,
        out_shape=(
            jax.ShapeDtypeStruct((B, Sq, hid), jnp.float32),
            jax.ShapeDtypeStruct((B, Sq, Sk), jnp.float32),
        ),
        grid_spec=pltpu.PrefetchScalarGridSpec(
            num_scalar_prefetch=0,
            grid=(B, Sq // tq),
            in_specs=in_specs,
            out_specs=[
                pl.BlockSpec((1, tq, hid), lambda b, i: (b, i, 0)),
                pl.BlockSpec((1, tq, Sk), lambda b, i: (b, i, 0)),
            ],
        ),
        compiler_params=pltpu.CompilerParams(
            # Keep B as the leading parallel axis so v7x megacore shards on
            # batch and K/V blocks are fetched once per batch per core.
            dimension_semantics=("parallel", "arbitrary" if B > 1 else "parallel"),
            vmem_limit_bytes=_VMEM_LIMIT,
        ),
    )(*inputs)
    return out, prob0


# ----------------------------------------------------------------------------
# MultiHeadAttention forward (glue in plain JAX; hot paths in Pallas kernels)
# ----------------------------------------------------------------------------
def multi_head_attention(params, q, k, v, attn_mask=None, *, n_heads, head_dim,
                         self_attention=False, causal=False, fast_math=False):
    B, Sq, hid = q.shape
    HD = n_heads * head_dim
    inv_scale = 1.0 / (float(head_dim) ** 0.5)

    # Fold 1/sqrt(head_dim) into the Q projection (free vs. per-score multiply).
    w_q = params["W_Q"] * inv_scale
    b_q = params["b_Q"] * inv_scale

    if self_attention:
        # Fused QKV projection: read the activation from HBM once.
        w_qkv = jnp.concatenate([w_q, params["W_K"], params["W_V"]], axis=0)
        b_qkv = jnp.concatenate([b_q, params["b_K"], params["b_V"]], axis=0)
        qkv = linear(q.reshape(B * Sq, hid), w_qkv, b_qkv, fast_math=fast_math)
        q_p = qkv[:, :HD].reshape(B, Sq, HD)
        k_p = qkv[:, HD:2 * HD].reshape(B, Sq, HD)
        v_p = qkv[:, 2 * HD:].reshape(B, Sq, HD)
    else:
        Sk = k.shape[1]
        q_p = linear(q.reshape(B * Sq, hid), w_q, b_q,
                     fast_math=fast_math).reshape(B, Sq, HD)
        k_p = linear(k.reshape(B * Sk, hid), params["W_K"], params["b_K"],
                     fast_math=fast_math).reshape(B, Sk, HD)
        v_p = linear(v.reshape(B * Sk, hid), params["W_V"], params["b_V"],
                     fast_math=fast_math).reshape(B, Sk, HD)

    # TODO(synk): under fast_math, also carry q_p/k_p/v_p as bf16 through HBM
    # to halve the attention DMA bytes (kept f32 here for reference fidelity).
    mask_i8 = None if causal else attn_mask.astype(jnp.int8)

    # Per-head split/merge + output projection all live inside the kernel —
    # no [B,H,S,D] transposes and no [B,Sq,H*D] context round-trip in HBM.
    out, top_attn = attention_with_out_proj(
        q_p, k_p, v_p, mask_i8, params["W_O"], params["b_O"],
        n_heads=n_heads, head_dim=head_dim, causal=causal, fast_math=fast_math,
    )

    # dropout(p=0) is identity.
    return out, top_attn


def init_params(key, hid_dim, n_heads, head_dim):
    proj = n_heads * head_dim
    ks = jax.random.split(key, 8)
    scale_in = 1.0 / (hid_dim ** 0.5)
    scale_proj = 1.0 / (proj ** 0.5)
    return {
        # Linear weights stored PyTorch-style: (out_features, in_features)
        "W_Q": jax.random.uniform(ks[0], (proj, hid_dim), jnp.float32, -scale_in, scale_in),
        "b_Q": jax.random.uniform(ks[1], (proj,), jnp.float32, -scale_in, scale_in),
        "W_K": jax.random.uniform(ks[2], (proj, hid_dim), jnp.float32, -scale_in, scale_in),
        "b_K": jax.random.uniform(ks[3], (proj,), jnp.float32, -scale_in, scale_in),
        "W_V": jax.random.uniform(ks[4], (proj, hid_dim), jnp.float32, -scale_in, scale_in),
        "b_V": jax.random.uniform(ks[5], (proj,), jnp.float32, -scale_in, scale_in),
        "W_O": jax.random.uniform(ks[6], (hid_dim, proj), jnp.float32, -scale_proj, scale_proj),
        "b_O": jax.random.uniform(ks[7], (hid_dim,), jnp.float32, -scale_proj, scale_proj),
    }


if __name__ == "__main__":
    hid_dim, n_heads, head_dim = 32, 4, 8
    B, S = 2, 8

    key = jax.random.PRNGKey(0)
    kp, kq, kk, kv = jax.random.split(key, 4)

    params = init_params(kp, hid_dim, n_heads, head_dim)
    q = jax.random.normal(kq, (B, S, hid_dim), jnp.float32)
    k = jax.random.normal(kk, (B, S, hid_dim), jnp.float32)
    v = jax.random.normal(kv, (B, S, hid_dim), jnp.float32)
    # boolean attention mask [B, Sq, Sk]: mask out "future" positions (causal)
    attn_mask = jnp.triu(jnp.ones((S, S), dtype=jnp.bool_), k=1)[None].repeat(B, axis=0)

    base = functools.partial(multi_head_attention, n_heads=n_heads, head_dim=head_dim)
    fwd = jax.jit(functools.partial(base, self_attention=False, causal=False))
    fwd_self = jax.jit(functools.partial(base, self_attention=True, causal=False))
    fwd_self_causal = jax.jit(functools.partial(base, self_attention=True, causal=True))
    fwd_fast = jax.jit(functools.partial(base, self_attention=True, causal=True,
                                         fast_math=True))

    # Faithful path: distinct q/k/v, runtime mask tensor.
    output, top_attn = fwd(params, q, k, v, attn_mask)
    # Fused-QKV path (tensor mask) and in-kernel causal-mask path must agree.
    out_s, attn_s = fwd_self(params, q, q, q, attn_mask)
    out_c, attn_c = fwd_self_causal(params, q, q, q, None)
    # bf16/approx fast-math path: compile coverage + sanity only.
    out_f, attn_f = fwd_fast(params, q, q, q, None)
    jax.block_until_ready((output, top_attn, out_s, attn_s, out_c, attn_c, out_f, attn_f))

    assert output.shape == (B, S, hid_dim)
    assert top_attn.shape == (B, S, S)
    assert jnp.allclose(out_s, out_c, rtol=1e-5, atol=1e-5)
    assert jnp.allclose(attn_s, attn_c, rtol=1e-5, atol=1e-5)
    assert bool(jnp.isfinite(out_f).all()) and bool(jnp.isfinite(attn_f).all())
    print("KERNEL_OK")
</pallas_src>

<mosaic_0001>
module attributes {stable_mosaic.version = 11 : i64} {
  func.func @_linear_kernel(%arg0: i32, %arg1: i32, %arg2: i32, %arg3: memref<16x32xf32, #tpu.memory_space<vmem>>, %arg4: memref<32x32xf32, #tpu.memory_space<vmem>>, %arg5: memref<1x32xf32, #tpu.memory_space<vmem>>, %arg6: memref<16x32xf32, #tpu.memory_space<vmem>>, %arg7: memref<16x32xf32, #tpu.memory_space<vmem>>) attributes {dimension_semantics = [#tpu.dimension_semantics<parallel>, #tpu.dimension_semantics<parallel>, #tpu.dimension_semantics<arbitrary>], iteration_bounds = array<i64: 1, 1, 1>, scalar_prefetch = 0 : i64, scratch_operands = 1 : i64, tpu.core_type = #tpu.core_type<tc>, window_params = [{transform_indices = @transform_0, window_bounds = array<i64: 16, 32>}, {transform_indices = @transform_1, window_bounds = array<i64: 32, 32>}, {transform_indices = @transform_2, window_bounds = array<i64: 1, 32>}, {transform_indices = @transform_3, window_bounds = array<i64: 16, 32>}]} {
    %c0_i32 = arith.constant 0 : i32
    %0 = arith.cmpi eq, %arg2, %c0_i32 : i32
    %1 = arith.extui %0 : i1 to i32
    %c0_i32_0 = arith.constant 0 : i32
    %2 = arith.cmpi ne, %1, %c0_i32_0 : i32
    scf.if %2 {
      %cst_10 = arith.constant 0.000000e+00 : f32
      %12 = vector.broadcast %cst_10 : f32 to vector<16x32xf32>
      %c0_11 = arith.constant 0 : index
      %c0_12 = arith.constant 0 : index
      %13 = vector.load %arg7[%c0_11, %c0_12] : memref<16x32xf32, #tpu.memory_space<vmem>>, vector<16x32xf32>
      tpu.vector_store %arg7[%c0_11, %c0_12], %12 {strides = array<i32>} : memref<16x32xf32, #tpu.memory_space<vmem>>, vector<16x32xf32>,
    } else {
    }
    %c0 = arith.constant 0 : index
    %c0_1 = arith.constant 0 : index
    %3 = vector.load %arg7[%c0, %c0_1] : memref<16x32xf32, #tpu.memory_space<vmem>>, vector<16x32xf32>
    %c0_2 = arith.constant 0 : index
    %c0_3 = arith.constant 0 : index
    %4 = vector.load %arg3[%c0_2, %c0_3] : memref<16x32xf32, #tpu.memory_space<vmem>>, vector<16x32xf32>
    %c0_4 = arith.constant 0 : index
    %c0_5 = arith.constant 0 : index
    %5 = vector.load %arg4[%c0_4, %c0_5] : memref<32x32xf32, #tpu.memory_space<vmem>>, vector<32x32xf32>
    %cst = arith.constant dense<0.000000e+00> : vector<16x32xf32>
    %6 = tpu.matmul %4, %5, %cst {dimension_numbers = #tpu.dot_dimension_numbers<[1], [1], [0], [0], [0, 0, 1, 0], [], []>} : vector<16x32xf32>, vector<32x32xf32>, vector<16x32xf32> -> vector<16x32xf32>
    %7 = arith.addf %3, %6 : vector<16x32xf32>
    %c0_6 = arith.constant 0 : index
    %c0_7 = arith.constant 0 : index
    %8 = vector.load %arg7[%c0_6, %c0_7] : memref<16x32xf32, #tpu.memory_space<vmem>>, vector<16x32xf32>
    tpu.vector_store %arg7[%c0_6, %c0_7], %7 {strides = array<i32>} : memref<16x32xf32, #tpu.memory_space<vmem>>, vector<16x32xf32>,
    %c0_i32_8 = arith.constant 0 : i32
    %9 = arith.cmpi eq, %arg2, %c0_i32_8 : i32
    %10 = arith.extui %9 : i1 to i32
    %c0_i32_9 = arith.constant 0 : i32
    %11 = arith.cmpi ne, %10, %c0_i32_9 : i32
    scf.if %11 {
      %c0_10 = arith.constant 0 : index
      %c0_11 = arith.constant 0 : index
      %12 = vector.load %arg7[%c0_10, %c0_11] : memref<16x32xf32, #tpu.memory_space<vmem>>, vector<16x32xf32>
      %c0_12 = arith.constant 0 : index
      %c0_13 = arith.constant 0 : index
      %13 = vector.load %arg5[%c0_12, %c0_13] : memref<1x32xf32, #tpu.memory_space<vmem>>, vector<1x32xf32>
      %14 = vector.broadcast %13 : vector<1x32xf32> to vector<16x32xf32>
      %15 = arith.addf %12, %14 : vector<16x32xf32>
      %c0_14 = arith.constant 0 : index
      %c0_15 = arith.constant 0 : index
      %16 = vector.load %arg6[%c0_14, %c0_15] : memref<16x32xf32, #tpu.memory_space<vmem>>, vector<16x32xf32>
      tpu.vector_store %arg6[%c0_14, %c0_15], %15 {strides = array<i32>} : memref<16x32xf32, #tpu.memory_space<vmem>>, vector<16x32xf32>,
    } else {
    }
    return
  }
  func.func @transform_0(%arg0: i32, %arg1: i32, %arg2: i32) -> (i32, i32) {
    %c0_i32 = arith.constant 0 : i32
    return %arg0, %arg2 : i32, i32
  }
  func.func @transform_1(%arg0: i32, %arg1: i32, %arg2: i32) -> (i32, i32) {
    %c0_i32 = arith.constant 0 : i32
    return %arg1, %arg2 : i32, i32
  }
  func.func @transform_2(%arg0: i32, %arg1: i32, %arg2: i32) -> (i32, i32) {
    %c0_i32 = arith.constant 0 : i32
    %c0_i32_0 = arith.constant 0 : i32
    return %c0_i32, %arg1 : i32, i32
  }
  func.func @transform_3(%arg0: i32, %arg1: i32, %arg2: i32) -> (i32, i32) {
    %c0_i32 = arith.constant 0 : i32
    return %arg0, %arg1 : i32, i32
  }
}

module attributes {stable_mosaic.version = 11 : i64} {
  func.func @_attention_kernel(%arg0: i32, %arg1: i32, %arg2: memref<1x8x32xf32, #tpu.memory_space<vmem>>, %arg3: memref<1x8x32xf32, #tpu.memory_space<vmem>>, %arg4: memref<1x8x32xf32, #tpu.memory_space<vmem>>, %arg5: memref<1x8x8xi8, #tpu.memory_space<vmem>>, %arg6: memref<32x32xf32, #tpu.memory_space<vmem>>, %arg7: memref<1x32xf32, #tpu.memory_space<vmem>>, %arg8: memref<1x8x32xf32, #tpu.memory_space<vmem>>, %arg9: memref<1x8x8xf32, #tpu.memory_space<vmem>>) attributes {dimension_semantics = [#tpu.dimension_semantics<parallel>, #tpu.dimension_semantics<arbitrary>], iteration_bounds = array<i64: 2, 1>, scalar_prefetch = 0 : i64, scratch_operands = 0 : i64, tpu.core_type = #tpu.core_type<tc>, window_params = [{transform_indices = @transform_0, window_bounds = array<i64: 1, 8, 32>}, {transform_indices = @transform_1, window_bounds = array<i64: 1, 8, 32>}, {transform_indices = @transform_2, window_bounds = array<i64: 1, 8, 32>}, {transform_indices = @transform_3, window_bounds = array<i64: 1, 8, 8>}, {pipeline_mode = #tpu.pipeline_mode<synchronous>, transform_indices = @transform_4, window_bounds = array<i64: 32, 32>}, {pipeline_mode = #tpu.pipeline_mode<synchronous>, transform_indices = @transform_5, window_bounds = array<i64: 1, 32>}, {transform_indices = @transform_6, window_bounds = array<i64: 1, 8, 32>}, {transform_indices = @transform_7, window_bounds = array<i64: 1, 8, 8>}]} {
    %c0 = arith.constant 0 : index
    %c0_0 = arith.constant 0 : index
    %c0_1 = arith.constant 0 : index
    %0 = vector.load %arg5[%c0, %c0_0, %c0_1] : memref<1x8x8xi8, #tpu.memory_space<vmem>>, vector<1x8x8xi8>
    %1 = vector.shape_cast %0 : vector<1x8x8xi8> to vector<8x8xi8>
    %c0_i8 = arith.constant 0 : i8
    %2 = vector.broadcast %c0_i8 : i8 to vector<8x8xi8>
    %3 = arith.cmpi ne, %1, %2 : vector<8x8xi8>
    %c0_2 = arith.constant 0 : index
    %c0_3 = arith.constant 0 : index
    %c0_4 = arith.constant 0 : index
    %4 = vector.load %arg2[%c0_2, %c0_3, %c0_4] : memref<1x8x32xf32, #tpu.memory_space<vmem>>, vector<1x8x8xf32>
    %5 = vector.shape_cast %4 : vector<1x8x8xf32> to vector<8x8xf32>
    %c0_5 = arith.constant 0 : index
    %c0_6 = arith.constant 0 : index
    %c0_7 = arith.constant 0 : index
    %6 = vector.load %arg3[%c0_5, %c0_6, %c0_7] : memref<1x8x32xf32, #tpu.memory_space<vmem>>, vector<1x8x8xf32>
    %7 = vector.shape_cast %6 : vector<1x8x8xf32> to vector<8x8xf32>
    %c0_8 = arith.constant 0 : index
    %c0_9 = arith.constant 0 : index
    %c0_10 = arith.constant 0 : index
    %8 = vector.load %arg4[%c0_8, %c0_9, %c0_10] : memref<1x8x32xf32, #tpu.memory_space<vmem>>, vector<1x8x8xf32>
    %9 = vector.shape_cast %8 : vector<1x8x8xf32> to vector<8x8xf32>
    %cst = arith.constant dense<0.000000e+00> : vector<8x8xf32>
    %10 = tpu.matmul %5, %7, %cst {dimension_numbers = #tpu.dot_dimension_numbers<[1], [1], [0], [0], [0, 0, 1, 0], [], []>} : vector<8x8xf32>, vector<8x8xf32>, vector<8x8xf32> -> vector<8x8xf32>
    %cst_11 = arith.constant -1.000000e+09 : f32
    %11 = vector.broadcast %cst_11 : f32 to vector<8x8xf32>
    %12 = arith.select %3, %11, %10 : vector<8x8xi1>, vector<8x8xf32>
    %cst_12 = arith.constant dense<0xFF800000> : vector<8xf32>
    %13 = vector.multi_reduction <maximumf>, %12, %cst_12 [1] : vector<8x8xf32> to vector<8xf32>
    %14 = vector.shape_cast %13 : vector<8xf32> to vector<8x1xf32>
    %15 = vector.broadcast %14 : vector<8x1xf32> to vector<8x8xf32>
    %16 = arith.subf %12, %15 : vector<8x8xf32>
    %17 = math.exp %16 : vector<8x8xf32>
    %cst_13 = arith.constant dense<0.000000e+00> : vector<8xf32>
    %18 = vector.multi_reduction <add>, %17, %cst_13 [1] : vector<8x8xf32> to vector<8xf32>
    %19 = vector.shape_cast %18 : vector<8xf32> to vector<8x1xf32>
    %20 = tpu.reciprocal %19 : vector<8x1xf32> -> vector<8x1xf32>
    %21 = vector.broadcast %20 : vector<8x1xf32> to vector<8x8xf32>
    %22 = arith.mulf %17, %21 : vector<8x8xf32>
    %cst_14 = arith.constant dense<0.000000e+00> : vector<8x8xf32>
    %23 = tpu.matmul %22, %9, %cst_14 {dimension_numbers = #tpu.dot_dimension_numbers<[1], [0], [0], [1], [0, 0, 1, 1], [], []>} : vector<8x8xf32>, vector<8x8xf32>, vector<8x8xf32> -> vector<8x8xf32>
    %c0_15 = arith.constant 0 : index
    %c0_16 = arith.constant 0 : index
    %c8 = arith.constant 8 : index
    %24 = vector.load %arg2[%c0_15, %c0_16, %c8] : memref<1x8x32xf32, #tpu.memory_space<vmem>>, vector<1x8x8xf32>
    %25 = vector.shape_cast %24 : vector<1x8x8xf32> to vector<8x8xf32>
    %c0_17 = arith.constant 0 : index
    %c0_18 = arith.constant 0 : index
    %c8_19 = arith.constant 8 : index
    %26 = vector.load %arg3[%c0_17, %c0_18, %c8_19] : memref<1x8x32xf32, #tpu.memory_space<vmem>>, vector<1x8x8xf32>
    %27 = vector.shape_cast %26 : vector<1x8x8xf32> to vector<8x8xf32>
    %c0_20 = arith.constant 0 : index
    %c0_21 = arith.constant 0 : index
    %c8_22 = arith.constant 8 : index
    %28 = vector.load %arg4[%c0_20, %c0_21, %c8_22] : memref<1x8x32xf32, #tpu.memory_space<vmem>>, vector<1x8x8xf32>
    %29 = vector.shape_cast %28 : vector<1x8x8xf32> to vector<8x8xf32>
    %cst_23 = arith.constant dense<0.000000e+00> : vector<8x8xf32>
    %30 = tpu.matmul %25, %27, %cst_23 {dimension_numbers = #tpu.dot_dimension_numbers<[1], [1], [0], [0], [0, 0, 1, 0], [], []>} : vector<8x8xf32>, vector<8x8xf32>, vector<8x8xf32> -> vector<8x8xf32>
    %cst_24 = arith.constant -1.000000e+09 : f32
    %31 = vector.broadcast %cst_24 : f32 to vector<8x8xf32>
    %32 = arith.select %3, %31, %30 : vector<8x8xi1>, vector<8x8xf32>
    %cst_25 = arith.constant dense<0xFF800000> : vector<8xf32>
    %33 = vector.multi_reduction <maximumf>, %32, %cst_25 [1] : vector<8x8xf32> to vector<8xf32>
    %34 = vector.shape_cast %33 : vector<8xf32> to vector<8x1xf32>
    %35 = vector.broadcast %34 : vector<8x1xf32> to vector<8x8xf32>
    %36 = arith.subf %32, %35 : vector<8x8xf32>
    %37 = math.exp %36 : vector<8x8xf32>
    %cst_26 = arith.constant dense<0.000000e+00> : vector<8xf32>
    %38 = vector.multi_reduction <add>, %37, %cst_26 [1] : vector<8x8xf32> to vector<8xf32>
    %39 = vector.shape_cast %38 : vector<8xf32> to vector<8x1xf32>
    %40 = tpu.reciprocal %39 : vector<8x1xf32> -> vector<8x1xf32>
    %41 = vector.broadcast %40 : vector<8x1xf32> to vector<8x8xf32>
    %42 = arith.mulf %37, %41 : vector<8x8xf32>
    %cst_27 = arith.constant dense<0.000000e+00> : vector<8x8xf32>
    %43 = tpu.matmul %42, %29, %cst_27 {dimension_numbers = #tpu.dot_dimension_numbers<[1], [0], [0], [1], [0, 0, 1, 1], [], []>} : vector<8x8xf32>, vector<8x8xf32>, vector<8x8xf32> -> vector<8x8xf32>
    %c0_28 = arith.constant 0 : index
    %c0_29 = arith.constant 0 : index
    %c16 = arith.constant 16 : index
    %44 = vector.load %arg2[%c0_28, %c0_29, %c16] : memref<1x8x32xf32, #tpu.memory_space<vmem>>, vector<1x8x8xf32>
    %45 = vector.shape_cast %44 : vector<1x8x8xf32> to vector<8x8xf32>
    %c0_30 = arith.constant 0 : index
    %c0_31 = arith.constant 0 : index
    %c16_32 = arith.constant 16 : index
    %46 = vector.load %arg3[%c0_30, %c0_31, %c16_32] : memref<1x8x32xf32, #tpu.memory_space<vmem>>, vector<1x8x8xf32>
    %47 = vector.shape_cast %46 : vector<1x8x8xf32> to vector<8x8xf32>
    %c0_33 = arith.constant 0 : index
    %c0_34 = arith.constant 0 : index
    %c16_35 = arith.constant 16 : index
    %48 = vector.load %arg4[%c0_33, %c0_34, %c16_35] : memref<1x8x32xf32, #tpu.memory_space<vmem>>, vector<1x8x8xf32>
    %49 = vector.shape_cast %48 : vector<1x8x8xf32> to vector<8x8xf32>
    %cst_36 = arith.constant dense<0.000000e+00> : vector<8x8xf32>
    %50 = tpu.matmul %45, %47, %cst_36 {dimension_numbers = #tpu.dot_dimension_numbers<[1], [1], [0], [0], [0, 0, 1, 0], [], []>} : vector<8x8xf32>, vector<8x8xf32>, vector<8x8xf32> -> vector<8x8xf32>
    %cst_37 = arith.constant -1.000000e+09 : f32
    %51 = vector.broadcast %cst_37 : f32 to vector<8x8xf32>
    %52 = arith.select %3, %51, %50 : vector<8x8xi1>, vector<8x8xf32>
    %cst_38 = arith.constant dense<0xFF800000> : vector<8xf32>
    %53 = vector.multi_reduction <maximumf>, %52, %cst_38 [1] : vector<8x8xf32> to vector<8xf32>
    %54 = vector.shape_cast %53 : vector<8xf32> to vector<8x1xf32>
    %55 = vector.broadcast %54 : vector<8x1xf32> to vector<8x8xf32>
    %56 = arith.subf %52, %55 : vector<8x8xf32>
    %57 = math.exp %56 : vector<8x8xf32>
    %cst_39 = arith.constant dense<0.000000e+00> : vector<8xf32>
    %58 = vector.multi_reduction <add>, %57, %cst_39 [1] : vector<8x8xf32> to vector<8xf32>
    %59 = vector.shape_cast %58 : vector<8xf32> to vector<8x1xf32>
    %60 = tpu.reciprocal %59 : vector<8x1xf32> -> vector<8x1xf32>
    %61 = vector.broadcast %60 : vector<8x1xf32> to vector<8x8xf32>
    %62 = arith.mulf %57, %61 : vector<8x8xf32>
    %cst_40 = arith.constant dense<0.000000e+00> : vector<8x8xf32>
    %63 = tpu.matmul %62, %49, %cst_40 {dimension_numbers = #tpu.dot_dimension_numbers<[1], [0], [0], [1], [0, 0, 1, 1], [], []>} : vector<8x8xf32>, vector<8x8xf32>, vector<8x8xf32> -> vector<8x8xf32>
    %c0_41 = arith.constant 0 : index
    %c0_42 = arith.constant 0 : index
    %c24 = arith.constant 24 : index
    %64 = vector.load %arg2[%c0_41, %c0_42, %c24] : memref<1x8x32xf32, #tpu.memory_space<vmem>>, vector<1x8x8xf32>
    %65 = vector.shape_cast %64 : vector<1x8x8xf32> to vector<8x8xf32>
    %c0_43 = arith.constant 0 : index
    %c0_44 = arith.constant 0 : index
    %c24_45 = arith.constant 24 : index
    %66 = vector.load %arg3[%c0_43, %c0_44, %c24_45] : memref<1x8x32xf32, #tpu.memory_space<vmem>>, vector<1x8x8xf32>
    %67 = vector.shape_cast %66 : vector<1x8x8xf32> to vector<8x8xf32>
    %c0_46 = arith.constant 0 : index
    %c0_47 = arith.constant 0 : index
    %c24_48 = arith.constant 24 : index
    %68 = vector.load %arg4[%c0_46, %c0_47, %c24_48] : memref<1x8x32xf32, #tpu.memory_space<vmem>>, vector<1x8x8xf32>
    %69 = vector.shape_cast %68 : vector<1x8x8xf32> to vector<8x8xf32>
    %cst_49 = arith.constant dense<0.000000e+00> : vector<8x8xf32>
    %70 = tpu.matmul %65, %67, %cst_49 {dimension_numbers = #tpu.dot_dimension_numbers<[1], [1], [0], [0], [0, 0, 1, 0], [], []>} : vector<8x8xf32>, vector<8x8xf32>, vector<8x8xf32> -> vector<8x8xf32>
    %cst_50 = arith.constant -1.000000e+09 : f32
    %71 = vector.broadcast %cst_50 : f32 to vector<8x8xf32>
    %72 = arith.select %3, %71, %70 : vector<8x8xi1>, vector<8x8xf32>
    %cst_51 = arith.constant dense<0xFF800000> : vector<8xf32>
    %73 = vector.multi_reduction <maximumf>, %72, %cst_51 [1] : vector<8x8xf32> to vector<8xf32>
    %74 = vector.shape_cast %73 : vector<8xf32> to vector<8x1xf32>
    %75 = vector.broadcast %74 : vector<8x1xf32> to vector<8x8xf32>
    %76 = arith.subf %72, %75 : vector<8x8xf32>
    %77 = math.exp %76 : vector<8x8xf32>
    %cst_52 = arith.constant dense<0.000000e+00> : vector<8xf32>
    %78 = vector.multi_reduction <add>, %77, %cst_52 [1] : vector<8x8xf32> to vector<8xf32>
    %79 = vector.shape_cast %78 : vector<8xf32> to vector<8x1xf32>
    %80 = tpu.reciprocal %79 : vector<8x1xf32> -> vector<8x1xf32>
    %81 = vector.broadcast %80 : vector<8x1xf32> to vector<8x8xf32>
    %82 = arith.mulf %77, %81 : vector<8x8xf32>
    %cst_53 = arith.constant dense<0.000000e+00> : vector<8x8xf32>
    %83 = tpu.matmul %82, %69, %cst_53 {dimension_numbers = #tpu.dot_dimension_numbers<[1], [0], [0], [1], [0, 0, 1, 1], [], []>} : vector<8x8xf32>, vector<8x8xf32>, vector<8x8xf32> -> vector<8x8xf32>
    %c0_54 = arith.constant 0 : index
    %c0_55 = arith.constant 0 : index
    %c0_56 = arith.constant 0 : index
    %84 = vector.load %arg9[%c0_54, %c0_55, %c0_56] : memref<1x8x8xf32, #tpu.memory_space<vmem>>, vector<1x8x8xf32>
    %85 = vector.shape_cast %84 : vector<1x8x8xf32> to vector<8x8xf32>
    %86 = vector.shape_cast %22 : vector<8x8xf32> to vector<1x8x8xf32>
    tpu.vector_store %arg9[%c0_54, %c0_55, %c0_56], %86 {strides = array<i32>} : memref<1x8x8xf32, #tpu.memory_space<vmem>>, vector<1x8x8xf32>,
    %87 = tpu.concatenate %23, %43, %63, %83 in 1 : vector<8x8xf32>, vector<8x8xf32>, vector<8x8xf32>, vector<8x8xf32> -> vector<8x32xf32>
    %c0_57 = arith.constant 0 : index
    %c0_58 = arith.constant 0 : index
    %88 = vector.load %arg6[%c0_57, %c0_58] : memref<32x32xf32, #tpu.memory_space<vmem>>, vector<32x32xf32>
    %cst_59 = arith.constant dense<0.000000e+00> : vector<8x32xf32>
    %89 = tpu.matmul %87, %88, %cst_59 {dimension_numbers = #tpu.dot_dimension_numbers<[1], [1], [0], [0], [0, 0, 1, 0], [], []>} : vector<8x32xf32>, vector<32x32xf32>, vector<8x32xf32> -> vector<8x32xf32>
    %c0_60 = arith.constant 0 : index
    %c0_61 = arith.constant 0 : index
    %90 = vector.load %arg7[%c0_60, %c0_61] : memref<1x32xf32, #tpu.memory_space<vmem>>, vector<1x32xf32>
    %91 = vector.broadcast %90 : vector<1x32xf32> to vector<8x32xf32>
    %92 = arith.addf %89, %91 : vector<8x32xf32>
    %c0_62 = arith.constant 0 : index
    %c0_63 = arith.constant 0 : index
    %c0_64 = arith.constant 0 : index
    %93 = vector.load %arg8[%c0_62, %c0_63, %c0_64] : memref<1x8x32xf32, #tpu.memory_space<vmem>>, vector<1x8x32xf32>
    %94 = vector.shape_cast %93 : vector<1x8x32xf32> to vector<8x32xf32>
    %95 = vector.shape_cast %92 : vector<8x32xf32> to vector<1x8x32xf32>
    tpu.vector_store %arg8[%c0_62, %c0_63, %c0_64], %95 {strides = array<i32>} : memref<1x8x32xf32, #tpu.memory_space<vmem>>, vector<1x8x32xf32>,
    return
  }
  func.func @transform_0(%arg0: i32, %arg1: i32) -> (i32, i32, i32) {
    %c0_i32 = arith.constant 0 : i32
    %c0_i32_0 = arith.constant 0 : i32
    return %arg0, %arg1, %c0_i32 : i32, i32, i32
  }
  func.func @transform_1(%arg0: i32, %arg1: i32) -> (i32, i32, i32) {
    %c0_i32 = arith.constant 0 : i32
    %c0_i32_0 = arith.constant 0 : i32
    %c0_i32_1 = arith.constant 0 : i32
    return %arg0, %c0_i32, %c0_i32_0 : i32, i32, i32
  }
  func.func @transform_2(%arg0: i32, %arg1: i32) -> (i32, i32, i32) {
    %c0_i32 = arith.constant 0 : i32
    %c0_i32_0 = arith.constant 0 : i32
    %c0_i32_1 = arith.constant 0 : i32
    return %arg0, %c0_i32, %c0_i32_0 : i32, i32, i32
  }
  func.func @transform_3(%arg0: i32, %arg1: i32) -> (i32, i32, i32) {
    %c0_i32 = arith.constant 0 : i32
    %c0_i32_0 = arith.constant 0 : i32
    return %arg0, %arg1, %c0_i32 : i32, i32, i32
  }
  func.func @transform_4(%arg0: i32, %arg1: i32) -> (i32, i32) {
    %c0_i32 = arith.constant 0 : i32
    %c0_i32_0 = arith.constant 0 : i32
    %c0_i32_1 = arith.constant 0 : i32
    return %c0_i32, %c0_i32_0 : i32, i32
  }
  func.func @transform_5(%arg0: i32, %arg1: i32) -> (i32, i32) {
    %c0_i32 = arith.constant 0 : i32
    %c0_i32_0 = arith.constant 0 : i32
    %c0_i32_1 = arith.constant 0 : i32
    return %c0_i32, %c0_i32_0 : i32, i32
  }
  func.func @transform_6(%arg0: i32, %arg1: i32) -> (i32, i32, i32) {
    %c0_i32 = arith.constant 0 : i32
    %c0_i32_0 = arith.constant 0 : i32
    return %arg0, %arg1, %c0_i32 : i32, i32, i32
  }
  func.func @transform_7(%arg0: i32, %arg1: i32) -> (i32, i32, i32) {
    %c0_i32 = arith.constant 0 : i32
    %c0_i32_0 = arith.constant 0 : i32
    return %arg0, %arg1, %c0_i32 : i32, i32, i32
  }
}

</mosaic_0001>

<bundles_post_ra>
// kernel: multi_head_attention.4
= control target key start
LH: loop header
LB: loop body
LE: loop exit
PB: predicated region body
PF: predicated region fallthrough
CT: control target
= control target key end

     0   :  { %vm18_vm0 = vcmask 261120   ;;  %v184_v2 = vmov 0.0   ;;  %s242_s1 = inlined_call_operand.vmem [shape: f32[32,32], index: 1, kind: input, shape index: {}]   ;;  %s243_s0 = inlined_call_operand.vmem [shape: f32[16,32], index: 0, kind: input, shape index: {}]   ;;  %s244_s2 = inlined_call_operand.vmem [shape: f32[1,32], index: 2, kind: input, shape index: {}]   ;;  %s245_s3 = inlined_call_operand.vmem [shape: f32[16,32], index: 3, kind: output, shape index: {}]  }
   0x1   :  { %v25_v0 = vld [vmem:[%s242_s1] sm:$0xff]  ;;  %v26_v1 = vld [vmem:[%s242_s1 + $0x8] sm:$0xff]  ;;  %vm172_vm1 = vmpackc.low %vm18_vm0, %vm18_vm0  ;;  %20 = vst.msk [vmem:[#allocation2 + $0x8] sm:$0xff] %vm18_vm0, %v184_v2 }
   0x2   :  { %19 = vst.msk [vmem:[#allocation2] sm:$0xff] %vm18_vm0, %v184_v2  ;;  %v171_v3 = vpack.c.bf16 %v26_v1, %v25_v0  ;;  %v27_v4 = vld [vmem:[%s242_s1 + $0x10] sm:$0xff]  ;;  %v28_v5 = vld [vmem:[%s242_s1 + $0x18] sm:$0xff]  ;;  %v23_v6 = vld [vmem:[%s243_s0] sm:$0xff] }
   0x3   :  { %v177_v7 = vpack.c.bf16 %v28_v5, %v27_v4  ;;  %168 = vmatprep.mubr.msk.f32.mxu0 %vm18_vm0, %v23_v6  ;;  %v24_v8 = vld [vmem:[%s243_s0 + $0x8] sm:$0xff]  ;;  %v153_v15 = vld [vmem:[%s244_s2] ss:$0 sm:$0xff] }
   0x4   :  { %173 = vmatprep.subr.msk.bf16.mxu0 %vm172_vm1, %v171_v3 }
   0x5   :  { %176 = vmatpush3.bf16.xpose.msk.msra.mxu0 %vm172_vm1, %v171_v3 }
   0x6   :  { %179 = vmatprep.subr.msk.bf16.mxu0 %vm172_vm1, %v177_v7 }
   0x8   :  { %v22_v9 = vld [vmem:[#allocation2 + $0x8] sm:$0xff] }
   0x9   :  { %v21_v10 = vld [vmem:[#allocation2] sm:$0xff] }
   0xd   :  { %182 = vmatpush3.bf16.xpose.msk.msra.mxu0 %vm172_vm1, %v177_v7 }
  0x14   :  { %169 = vmatmul.mubr.msk.f32.vlgmr.msra.gmra.mrb[0].mxu0 %vm18_vm0, %v24_v8 }
  0xe7   :  { %v170_v11 = vpop.f32.mrb[0].mxu0 }
  0xe8   :  { %v124_v12 = vadd.f32 %v170_v11, %v22_v9  ;;  %v114_v13 = vpop.f32.mrb[1].mxu0 }
  0xe9   :  { %v123_v14 = vadd.f32 %v114_v13, %v21_v10 }
  0xea   :  { %126 = vst.msk [vmem:[#allocation2 + $0x8] sm:$0xff] %vm18_vm0, %v124_v12 }
  0xeb   :  { %125 = vst.msk [vmem:[#allocation2] sm:$0xff] %vm18_vm0, %v123_v14 }
  0xf1   :  { %v131_v16 = vld [vmem:[#allocation2 + $0x8] sm:$0xff] }
  0xf2   :  { %v140_v17 = vadd.f32 %v153_v15, %v131_v16  ;;  %v130_v18 = vld [vmem:[#allocation2] sm:$0xff] }
  0xf3   :  { %v139_v19 = vadd.f32 %v153_v15, %v130_v18 }
  0xf4   :  { %142 = vst.msk [vmem:[%s245_s3 + $0x8] sm:$0xff] %vm18_vm0, %v140_v17 }
  0xf5   :  { %141 = vst.msk [vmem:[%s245_s3] sm:$0xff] %vm18_vm0, %v139_v19 }

// kernel: multi_head_attention.7
= control target key start
LH: loop header
LB: loop body
LE: loop exit
PB: predicated region body
PF: predicated region fallthrough
CT: control target
= control target key end

     0   :  { %13 = vsyncpa [#allocation3], 0  ;;  %s1965_s0 = inlined_call_operand.vmem [shape: f32[2,8,32], index: 0, kind: input, shape index: {}]   ;;  %s1966_s1 = inlined_call_operand.vmem [shape: f32[2,8,32], index: 1, kind: input, shape index: {}]   ;;  %s1967_s2 = inlined_call_operand.vmem [shape: f32[2,8,32], index: 2, kind: input, shape index: {}]   ;;  %s1968_s3 = inlined_call_operand.vmem [shape: s8[2,8,8], index: 3, kind: input, shape index: {}]   ;;  %s1969_s4 = inlined_call_operand.vmem [shape: f32[32,32], index: 4, kind: input, shape index: {}]   ;;  %s1970_s5 = inlined_call_operand.vmem [shape: f32[1,32], index: 5, kind: input, shape index: {}]   ;;  %s1971_s6 = inlined_call_operand.hbm [shape: f32[2,8,32], index: 6, kind: output, shape index: {0}]   ;;  %s1972_s7 = inlined_call_operand.hbm [shape: f32[2,8,8], index: 7, kind: output, shape index: {1}]  }
   0x1   :  { %15 = vsyncpa [#allocation3 + $0x1], 0 }
   0x2   :  { %16 = vsyncpa [#allocation5], 0 }
   0x3   :  { %18 = vsyncpa [#allocation5 + $0x1], 0  ;;  %s1703_s24 = smov 0   ;;  %s1705_s25 = smov 0  }
   0x4   :  { %s1707_s26 = smov 0   ;;  %s1709_s27 = smov 0  }
   0x5   :  { %s1711_s28 = smov 0   ;;  %s1713_s29 = smov 0  }
   0x6 LB: > { %s1338_s30 = sadd.s32 4294967295, %s1649_s29   ;;  %s1339_s8 = sadd.s32 4294967294, %s1649_s29   ;;  %s1649_s29 = sphi %s1713_s29, %s24_s29   ;;  %s1645_s28 = sphi %s1711_s28, %s1983_s28   ;;  %s1641_s27 = sphi %s1709_s27, %s1982_s27   ;;  %s1637_s26 = sphi %s1707_s26, %s1981_s26   ;;  %s1633_s25 = sphi %s1705_s25, %s1980_s25   ;;  %s1629_s24 = sphi %s1703_s24, %s1979_s24  }
   0x7   : > { %s36_s9 = sadd.s32 1, %s1645_s28  ;;  %s195_s10 = sadd.s32 1, %s1637_s26 }
   0x8   : > { %p38_p0 = scmp.ge.s32.totalorder %s36_s9, 2  ;;  %p205_p1 = scmp.ne.s32.totalorder %s1637_s26, %s1633_s25 }
   0x9   : > { %p206_p2 = scmp.eq.s32.totalorder %s1338_s30, 1  ;;  %p211_p3 = scmp.ne.s32.totalorder %s1633_s25, %s1629_s24 }
   0xa   : > { %s1985_s9 = smov (%p38_p0, %s36_s9), 0  ;;  %p212_p5 = scmp.eq.s32.totalorder %s1339_s8, 1 }
   0xb   : > { %p1743_p4 = por %p206_p2, %p205_p1  ;;  %s190_s12 = ssub.s32 %s1645_s28, %s1985_s9 }
   0xc   : > { %p1342_p6 = scmp.ge.s32.totalorder %s1649_s29, 1  ;;  %p193_p7 = scmp.eq.s32.totalorder %s190_s12, 0 }
   0xd   : > { %p1750_p8 = por %p212_p5, %p211_p3  ;;  %p298_p9 = scmp.lt.s32.totalorder %s1649_s29, 3 }
   0xe   : > { %s1756_s14 = scalar_select %p193_p7, %s1637_s26, %s195_s10  }
   0xf   : > { %p299_p10 = pnand %p1342_p6, %p298_p9 }
  0x10   : > { %p352_p11 = scmp.lt.s32.totalorder (!%p299_p10), %s1641_s27, 1  ;;  %v1651_v0 = vmov (!%p299_p10), 0.0   ;;  %vm1652_vm0 = vmmov (!%p299_p10), 0   ;;  %vm381_vm1 = vcmask (!%p299_p10), 64512   ;;  %v1653_v4 = vmov (!%p299_p10), 0   ;;  %s1654_s12 = smov (!%p299_p10), 120  }
  0x11   : > { %302 = sbr.rel (%p299_p10) target bundleno = 1711 (0x6af), region = 44  ;;  %1394 = vmatprep.subr.mxu0 (!%p299_p10), %v1651_v0  ;;  %1396 = vmatprep.mubr.msk.f32.mxu0 (!%p299_p10), %vm1652_vm0, %v1651_v0  ;;  %s1656_s17 = smov (!%p299_p10), 104   ;;  %vm1074_vm4 = vcmask (!%p299_p10), 261120   ;;  %v1657_v7 = vmov (!%p299_p10), 0.0|0.0   ;;  %vm1059_vm6 = vcmask (!%p299_p10), 130048   ;;  %vm1061_vm7 = vcmask (!%p299_p10), 195584  }
  0x12   : > { %1414 = vmatprep.subr.mxu1 (!%p299_p10), %v1651_v0  ;;  %1416 = vmatprep.mubr.msk.f32.mxu1 (!%p299_p10), %vm1652_vm0, %v1651_v0  ;;  %s1808_s21 = sand.u32 (!%p299_p10), 1, %s1633_s25   ;;  %vm1447_vm5 = vmpackc.low (!%p299_p10), %vm1074_vm4, %vm1074_vm4  ;;  %s1973_s30 = sshll.u32 (!%p299_p10), %s1641_s27, 7 }
  0x18   : > { %s353_s15 = scalar_select %p352_p11, %s1641_s27, 1 }
  0x1a   : > { %s1766_s16 = sshll.u32 %s353_s15, 3  ;;  %s1348_s23 = sshll.u32 %s353_s15, 1 }
  0x1b   : > { %s362_s19 = scalar_lea.vmem %s1966_s1, %s1766_s16  ;;  %s358_s22 = scalar_lea.vmem %s1965_s0, %s1766_s16 }
  0x1c   : > { %v379_v1 = vld [vmem:[%s362_s19] sm:$0xff]  ;;  %s373_s10 = scalar_lea.vmem %s1968_s3, %s1348_s23  ;;  %s1655_s15 = smov 112  }
  0x1d   : > { %1395 = vmatpush3.xpose.msk.msra.mxu0 %vm381_vm1, %v379_v1  ;;  %v378_v2 = vld [vmem:[%s358_s22] sm:$0xff]  ;;  %548 = vrot.lane.b32.xlu1 %v379_v1, %s1654_s12  ;;  %s366_s20 = scalar_lea.vmem %s1967_s2, %s1766_s16  ;;  %s1343_s16 = sshll.u32 %s1808_s21, 3 }
  0x1e   : > { %1399 = vmatprep.subr.mxu0 %v1651_v0  ;;  %v376_v3 = vld [vmem:[%s373_s10] sm:$0x3]  ;;  %s1822_s22 = scalar_lea.vmem [#allocation4], %s1343_s16  ;;  %s1658_s19 = smov 8  }
  0x1f   : > { %vm377_vm2 = vnez %v376_v3  ;;  %v1801_v17 = vld [vmem:[%s366_s20] sm:$0xff]  ;;  %s1659_s20 = smov 16   ;;  %s1660_s23 = smov 24  }
  0x20   : > { %1397 = vmatmul.mubr.msk.f32.vlgmr.msra.gmra.mrb[0].mxu0 %vm381_vm1, %v378_v2  ;;  %v458_v5 = vsel %vm377_vm2, 16843009, %v1653_v4 }
  0x21   : > { %1401 = vmatprep.mubr.msk.f32.mxu0 %vm1652_vm0, %v1651_v0  ;;  %v459_v6 = vunpack.c.0.s8 %v458_v5  ;;  %546 = vrot.lane.b32.xlu1 %v378_v2, %s1654_s12  ;;  %v1063_v5 = vld [vmem:[%s1969_s4] sm:$0xff] }
  0x22   : > { %1400 = vmatpush3.msra.mxu0 %v1801_v17 }
  0x23   : > { %vm1784_vm3 = vcmp.ne.s32.totalorder %v459_v6, 0  ;;  %1404 = vmatprep.subr.mxu0 %v1651_v0  ;;  %v1064_v6 = vld [vmem:[%s1969_s4 + $0x8] sm:$0xff] }
  0x25   : > { %713 = vrot.lane.b32.xlu1 %v378_v2, %s1655_s15 }
  0x29   : > { %881 = vrot.lane.b32.xlu1 %v379_v1, %s1656_s17 }
  0x2d   : > { %879 = vrot.lane.b32.xlu1 %v378_v2, %s1656_s17 }
  0x8f   : > { %v549_v18 = vpop.permute.xlu1 %548 }
  0x93   : > { %v547_v19 = vpop.permute.xlu1 %546 }
  0x97   : > { %v714_v20 = vpop.permute.xlu1 %713 }
  0x9b   : > { %v882_v22 = vpop.permute.xlu1 %881 }
  0x9f   : > { %v880_v24 = vpop.permute.xlu1 %879 }
  0xf3   : > { %v454_v8 = vpop.f32.mrb[0].mxu0 }
  0xf4   : > { %v461_v9 = vsel %vm1784_vm3, -1e+09, %v454_v8  ;;  %v1398_v10 = vpop.f32.mrb[1].mxu0  ;;  %v1446_v8 = vpack.c.bf16 %v1064_v6, %v1063_v5 }
  0xf5   : > { %v462_v11 = vsel %vm381_vm1, %v461_v9, -inf }
  0xf6   : > { %463 = vmax.xlane.f32.xlu0 %v462_v11 }
 0x183   : > { %v464_v12 = vpop.xlane.xlu0 %463 }
 0x184   : > { %v465_v13 = vsub.f32 %v461_v9, %v464_v12  ;;  %v1066_v9 = vld [vmem:[%s1969_s4 + $0x18] sm:$0xff] }
 0x186   : > { %v466_v14 = vmul.f32 1.442695, %v465_v13 }
 0x188   : > { %1523 = vpow2.f32 %v466_v14 }
 0x192   : > { %v1524_v15 = vpop.eup %1523 }
 0x193   : > { %v468_v16 = vsel %vm381_vm1, %v1524_v15, 0.0 }
 0x194   : > { %469 = vadd.xlane.f32.xlu0 %v468_v16 }
 0x1aa   : > { %715 = vrot.lane.b32.xlu0 %v379_v1, %s1655_s15 }
 0x221   : > { %v470_v21 = vpop.xlane.xlu0 %469 }
 0x222   : > { %1525 = vrcp.f32 %v470_v21 }
 0x225   : > { %v716_v23 = vpop.permute.xlu0 %715 }
 0x226   : > { %1415 = vmatpush3.xpose.msk.msra.mxu1 %vm381_vm1, %v716_v23 }
 0x227   : > { %1424 = vmatprep.subr.mxu1 %v1651_v0 }
 0x229   : > { %1417 = vmatmul.mubr.msk.f32.vlgmr.msra.gmra.mrb[0].mxu1 %vm381_vm1, %v714_v20 }
 0x22a   : > { %1425 = vmatpush3.xpose.msk.msra.mxu1 %vm381_vm1, %v882_v22  ;;  %1426 = vmatprep.mubr.msk.f32.mxu1 %vm1652_vm0, %v1651_v0 }
 0x22b   : > { %1445 = vmatprep.subr.bf16.mxu1 %v1657_v7 }
 0x22c   : > { %v1526_v25 = vpop.eup %1525 }
 0x22d   : > { %v472_v26 = vmul.f32 %v1526_v25, %v1524_v15  ;;  %1427 = vmatmul.mubr.msk.f32.vlgmr.msra.gmra.mrb[2].mxu1 %vm381_vm1, %v880_v24 }
 0x22e   : > { %1442 = vmatprep.mubr.msk.f32.mxu1 %vm1652_vm0, %v1651_v0  ;;  %1448 = vmatpush3.bf16.xpose.msk.msra.mxu1 %vm1447_vm5, %v1446_v8 }
 0x22f   : > { %1402 = vmatmul.mubr.msk.f32.vlgmr.msra.gmra.mrb[2].mxu0 %vm381_vm1, %v472_v26  ;;  %1045 = vst.msk [vmem:[%s1822_s22] sm:$0xff] %vm381_vm1, %v472_v26  ;;  %1449 = vmatprep.subr.bf16.mxu1 %v1657_v7 }
 0x230   : > { %1405 = vmatpush3.xpose.msk.msra.mxu0 %vm381_vm1, %v549_v18  ;;  %1406 = vmatprep.mubr.msk.f32.mxu0 %vm1652_vm0, %v1651_v0 }
 0x231   : > { %1409 = vmatprep.subr.mxu0 %v1651_v0 }
 0x233   : > { %1407 = vmatmul.mubr.msk.f32.vlgmr.msra.gmra.mrb[4].mxu0 %vm381_vm1, %v547_v19 }
 0x234   : > { %1411 = vmatprep.mubr.msk.f32.mxu0 %vm1652_vm0, %v1651_v0 }
 0x2fc   : > { %v787_v27 = vpop.f32.mrb[0].mxu1 }
 0x2fd   : > { %v791_v28 = vsel %vm1784_vm3, -1e+09, %v787_v27  ;;  %v1418_v29 = vpop.f32.mrb[1].mxu1 }
 0x2fe   : > { %v792_v30 = vsel %vm381_vm1, %v791_v28, -inf }
 0x2ff   : > { %793 = vmax.xlane.f32.xlu0 %v792_v30 }
 0x300   : > { %v953_v31 = vpop.f32.mrb[2].mxu1 }
 0x301   : > { %v1428_v32 = vpop.f32.mrb[3].mxu1  ;;  %v957_v38 = vsel %vm1784_vm3, -1e+09, %v953_v31 }
 0x302   : > { %v1836_v33 = vpop.f32.mrb[2].mxu0  ;;  %v958_v40 = vsel %vm381_vm1, %v957_v38, -inf }
 0x303   : > { %v1403_v34 = vpop.f32.mrb[3].mxu0 }
 0x306   : > { %v620_v35 = vpop.f32.mrb[4].mxu0 }
 0x307   : > { %v624_v36 = vsel %vm1784_vm3, -1e+09, %v620_v35  ;;  %v1408_v37 = vpop.f32.mrb[5].mxu0 }
 0x308   : > { %v625_v39 = vsel %vm381_vm1, %v624_v36, -inf }
 0x309   : > { %626 = vmax.xlane.f32.xlu1 %v625_v39 }
 0x30d   : > { %959 = vmax.xlane.f32.xlu1 %v958_v40 }
 0x38c   : > { %v794_v41 = vpop.xlane.xlu0 %793 }
 0x38d   : > { %v795_v42 = vsub.f32 %v791_v28, %v794_v41 }
 0x38f   : > { %v796_v43 = vmul.f32 1.442695, %v795_v42 }
 0x391   : > { %1527 = vpow2.f32 %v796_v43 }
 0x396   : > { %v627_v44 = vpop.xlane.xlu1 %626 }
 0x397   : > { %v628_v52 = vsub.f32 %v624_v36, %v627_v44 }
 0x399   : > { %v629_v53 = vmul.f32 1.442695, %v628_v52 }
 0x39a   : > { %v960_v45 = vpop.xlane.xlu1 %959 }
 0x39b   : > { %v1528_v46 = vpop.eup %1527  ;;  %v961_v47 = vsub.f32 %v957_v38, %v960_v45 }
 0x39c   : > { %v798_v48 = vsel %vm381_vm1, %v1528_v46, 0.0 }
 0x39d   : > { %v962_v49 = vmul.f32 1.442695, %v961_v47  ;;  %799 = vadd.xlane.f32.xlu0 %v798_v48 }
 0x39f   : > { %1529 = vpow2.f32 %v962_v49 }
 0x3a0   : > { %1531 = vpow2.f32 %v629_v53 }
 0x3a9   : > { %v1530_v50 = vpop.eup %1529 }
 0x3aa   : > { %v964_v51 = vsel %vm381_vm1, %v1530_v50, 0.0  ;;  %v1532_v54 = vpop.eup %1531 }
 0x3ab   : > { %965 = vadd.xlane.f32.xlu1 %v964_v51  ;;  %v631_v55 = vsel %vm381_vm1, %v1532_v54, 0.0 }
 0x3b3   : > { %637 = vrot.lane.b32.xlu0 %v1801_v17, %s1654_s12  ;;  %s1885_s12 = scalar_lea.hbm %s1972_s7, %s1973_s30 }
 0x3bc   : > { %803 = vrot.lane.b32.xlu1 %v1801_v17, %s1655_s15  ;;  %s1195_s15 = sshll.u32 %s1822_s22, 4  ;;  %s1196_s15 = int_to_ptr.vmem [resolvable:$true] %s1195_s15 }
 0x3bd   : > { %s1539_s18 = scalar_lea.vmem %s1196_s15, 128 }
 0x3be   : > { %p1540_p12 = scmp.ne.s32.totalorder %s1196_s15, %s1539_s18 }
 0x3c0   : > { %p1541_p13 = pnand %p1540_p12, %p1743_p4 }
 0x3c2   : > { %p1542_p0 = pneg %p1541_p13 }
 0x3e0   : > { %632 = vadd.xlane.f32.xlu1 %v631_v55 }
 0x3f1   : > { %969 = vrot.lane.b32.xlu1 %v1801_v17, %s1656_s17  ;;  %s1167_s17 = scalar_lea.sflag [#allocation5], %s1808_s21 }
 0x42a   : > { %v800_v56 = vpop.xlane.xlu0 %799 }
 0x42e   : > { %v638_v57 = vpop.permute.xlu0 %637 }
 0x42f   : > { %1410 = vmatpush3.msra.mxu0 %v638_v57 }
 0x430   : > { %1419 = vmatprep.subr.mxu0 %v1651_v0 }
 0x438   : > { %v966_v58 = vpop.xlane.xlu1 %965 }
 0x43c   : > { %v804_v59 = vpop.permute.xlu1 %803 }
 0x46d   : > { %v633_v60 = vpop.xlane.xlu1 %632 }
 0x46e   : > { %1533 = vrcp.f32 %v633_v60 }
 0x46f   : > { %1535 = vrcp.f32 %v800_v56 }
 0x470   : > { %1537 = vrcp.f32 %v966_v58 }
 0x471   : > { %v970_v2 = vpop.permute.xlu1 %969 }
 0x478   : > { %v1534_v61 = vpop.eup %1533 }
 0x479   : > { %v635_v62 = vmul.f32 %v1534_v61, %v1532_v54  ;;  %v1536_v63 = vpop.eup %1535 }
 0x47a   : > { %v802_v1 = vmul.f32 %v1536_v63, %v1528_v46  ;;  %v1538_v3 = vpop.eup %1537 }
 0x47b   : > { %1412 = vmatmul.mubr.msk.f32.vlgmr.msra.gmra.mrb[6].mxu0 %vm381_vm1, %v635_v62  ;;  %v968_v4 = vmul.f32 %v1538_v3, %v1530_v50 }
 0x47c   : > { %1420 = vmatpush3.msra.mxu0 %v804_v59  ;;  %1421 = vmatprep.mubr.msk.f32.mxu0 %vm1652_vm0, %v1651_v0 }
 0x47d   : > { %1429 = vmatprep.subr.mxu0 %v1651_v0 }
 0x47f   : > { %1422 = vmatmul.mubr.msk.f32.vlgmr.msra.gmra.mrb[8].mxu0 %vm381_vm1, %v802_v1 }
 0x480   : > { %1430 = vmatpush3.msra.mxu0 %v970_v2  ;;  %1431 = vmatprep.mubr.msk.f32.mxu0 %vm1652_vm0, %v1651_v0  ;;  %v1065_v0 = vld [vmem:[%s1969_s4 + $0x10] sm:$0xff] }
 0x481   : > { %v1450_v10 = vpack.c.bf16 %v1066_v9, %v1065_v0 }
 0x483   : > { %1432 = vmatmul.mubr.msk.f32.vlgmr.msra.gmra.mrb[10].mxu0 %vm381_vm1, %v968_v4  ;;  %1452 = vmatpush3.bf16.xpose.msk.msra.mxu1 %vm1447_vm5, %v1450_v10 }
 0x54e   : > { %v709_v11 = vpop.f32.mrb[6].mxu0 }
 0x54f   : > { %1047 = vrot.lane.b32.xlu0 %v709_v11, %s1658_s19  ;;  %v1413_v12 = vpop.f32.mrb[7].mxu0  ;;  %s1661_s19 = smov [#allocation4]  }
 0x552   : > { %v875_v13 = vpop.f32.mrb[8].mxu0 }
 0x553   : > { %1051 = vrot.lane.b32.xlu1 %v875_v13, %s1659_s20  ;;  %v1423_v14 = vpop.f32.mrb[9].mxu0  ;;  %s1543_s20 = sshll.u32 %s1661_s19, 4  ;;  %s1544_s20 = int_to_ptr.vmem [resolvable:$false] %s1543_s20 }
 0x554   : > { %p1546_p1 = scmp.lt.s32.totalorder %s1196_s15, %s1544_s20 }
 0x556   : > { %v1041_v15 = vpop.f32.mrb[10].mxu0 }
 0x557   : > { %1055 = vrot.lane.b32.xlu0 %v1041_v15, %s1660_s23  ;;  %v1433_v16 = vpop.f32.mrb[11].mxu0  ;;  %s1545_s23 = scalar_lea.vmem %s1544_s20, 256 }
 0x558   : > { %p1547_p2 = scmp.lt.s32.totalorder %s1545_s23, %s1539_s18 }
 0x55a   : > { %p1548_p3 = por %p1547_p2, %p1546_p1 }
 0x55c   : > { %p1549_p5 = pnand %p1548_p3, %p1542_p0 }
 0x5c1   : > { %v1048_v17 = vpop.permute.xlu0 %1047 }
 0x5c2   : > { %v1058_v19 = vsel %vm381_vm1, %v1836_v33, %v1048_v17 }
 0x5c5   : > { %v1052_v18 = vpop.permute.xlu1 %1051 }
 0x5c6   : > { %v1060_v20 = vsel %vm1059_vm6, %v1058_v19, %v1052_v18 }
 0x5c9   : > { %v1056_v21 = vpop.permute.xlu0 %1055 }
 0x5ca   : > { %v1062_v22 = vsel %vm1061_vm7, %v1060_v20, %v1056_v21 }
 0x5cb   : > { %1443 = vmatmul.mubr.msk.f32.vlgmr.msra.gmra.mrb[4].mxu1 %vm1074_vm4, %v1062_v22 }
 0x5cc   : > { %1552 = shalt.err (!%p1549_p5)
}
 0x5cd   : > { %s1553_s22 = scalar_lea.hbm %s1885_s12, 128  ;;  %s1557_s19 = scalar_lea.hbm %s1972_s7, 256 }
 0x5ce   : > { %p1554_p6 = scmp.ne.s32.totalorder %s1885_s12, %s1553_s22  ;;  %p1558_p10 = scmp.lt.u32.totalorder %s1885_s12, %s1972_s7 }
 0x5cf   : > { %p1559_p11 = scmp.lt.u32.totalorder %s1557_s19, %s1553_s22  ;;  %p1561_p13 = scmp.lt.u32.totalorder %s1553_s22, %s1885_s12 }
 0x5d0   : > { %p1555_p7 = pnand %p1554_p6, %p1743_p4 }
 0x5d1   : > { %p1560_p12 = por %p1559_p11, %p1558_p10 }
 0x5d2   : > { %p1556_p9 = pneg %p1555_p7 }
 0x5d3   : > { %p1562_p0 = por %p1561_p13, %p1560_p12 }
 0x5d5   : > { %p1563_p1 = pnand %p1562_p0, %p1556_p9 }
 0x5d7   : > { %1566 = shalt.err (!%p1563_p1)
}
 0x5d8   : > { %1454 = dma.vmem_to_hbm [thread:$0]  (%p1743_p4), %s1196_s15, 128, %s1885_s12, %s1167_s17   ;;  %v1361_v23 = vld [vmem:[%s1970_s5] ss:$0 sm:$0xff] }
 0x5d9   : > { %s344_s30 = scalar_lea.vmem [#allocation2], %s1343_s16  ;;  %s1978_s22 = sshll.u32 %s1641_s27, 7 }
 0x5da   : > { %s1181_s8 = sshll.u32 %s344_s30, 4  ;;  %s1916_s20 = scalar_lea.hbm %s1971_s6, %s1978_s22  ;;  %s1918_s8 = int_to_ptr.vmem [resolvable:$true] %s1181_s8 }
 0x5db   : > { %s1162_s12 = scalar_lea.sflag [#allocation3], %s1808_s21  ;;  %s1567_s15 = scalar_lea.vmem %s1918_s8, 128 }
 0x5dc   : > { %p1568_p2 = scmp.ne.s32.totalorder %s1918_s8, %s1567_s15  ;;  %s1662_s16 = smov [#allocation2]  }
 0x5dd   : > { %s1571_s27 = sshll.u32 %s1662_s16, 4  ;;  %s1572_s27 = int_to_ptr.vmem [resolvable:$false] %s1571_s27 }
 0x5de   : > { %p1569_p3 = pnand %p1568_p2, %p1743_p4  ;;  %s1573_s17 = scalar_lea.vmem %s1572_s27, 256 }
 0x5df   : > { %p1574_p6 = scmp.lt.s32.totalorder %s1918_s8, %s1572_s27  ;;  %p1575_p7 = scmp.lt.s32.totalorder %s1573_s17, %s1567_s15 }
 0x5e0   : > { %p1570_p5 = pneg %p1569_p3 }
 0x5e1   : > { %p1576_p9 = por %p1575_p7, %p1574_p6 }
 0x5e3   : > { %p1577_p10 = pnand %p1576_p9, %p1570_p5 }
 0x69e   : > { %v1156_v24 = vpop.f32.mrb[4].mxu1 }
 0x69f   : > { %v1157_v25 = vadd.f32 %v1361_v23, %v1156_v24  ;;  %v1444_v26 = vpop.f32.mrb[5].mxu1 }
 0x6a1   : > { %1160 = vst.msk [vmem:[%s344_s30] sm:$0xff] %vm1074_vm4, %v1157_v25 }
 0x6a2   : > { %1580 = shalt.err (!%p1577_p10)
}
 0x6a3   : > { %s1581_s21 = scalar_lea.hbm %s1916_s20, 128  ;;  %s1585_s30 = scalar_lea.hbm %s1971_s6, 256 }
 0x6a4   : > { %p1582_p11 = scmp.ne.s32.totalorder %s1916_s20, %s1581_s21  ;;  %p1586_p0 = scmp.lt.u32.totalorder %s1916_s20, %s1971_s6 }
 0x6a5   : > { %p1587_p1 = scmp.lt.u32.totalorder %s1585_s30, %s1581_s21  ;;  %p1589_p3 = scmp.lt.u32.totalorder %s1581_s21, %s1916_s20 }
 0x6a6   : > { %p1583_p12 = pnand %p1582_p11, %p1743_p4 }
 0x6a7   : > { %p1588_p2 = por %p1587_p1, %p1586_p0 }
 0x6a8   : > { %p1584_p13 = pneg %p1583_p12 }
 0x6a9   : > { %p1590_p5 = por %p1589_p3, %p1588_p2 }
 0x6ab   : > { %p1591_p6 = pnand %p1590_p5, %p1584_p13 }
 0x6ad   : > { %1594 = shalt.err (!%p1591_p6)
}
 0x6ae   : > { %1453 = dma.vmem_to_hbm [thread:$0]  (%p1743_p4), %s1918_s8, 128, %s1916_s20, %s1162_s12  }
 0x6af PF: > { %p1464_p7 = scmp.ge.s32.totalorder %s1649_s29, 2  ;;  %s1207_s19 = sand.u32 1, %s1629_s24  }
 0x6b0   : > { %s1208_s15 = scalar_lea.sflag [#allocation3], %s1207_s19 }
 0x6b1   : > { %p1458_p9 = pnand %p1464_p7, %p1750_p8 }
 0x6b3   : > { %1620 = dma.done.wait (!%p1458_p9), %s1208_s15, 128  }
 0x6b4   : > { %1622 = vsyncadd (!%p1458_p9), %s1208_s15, 4294967168  ;;  %s1217_s16 = scalar_lea.sflag [#allocation5], %s1207_s19 }
 0x6b5   : > { %1624 = dma.done.wait (!%p1458_p9), %s1217_s16, 128  }
 0x6b6   : > { %1626 = vsyncadd (!%p1458_p9), %s1217_s16, 4294967168  ;;  %s24_s29 = sadd.s32 1, %s1649_s29   ;;  %s1979_s24 = smov %s1633_s25 }
 0x6b7   : > { %p21_p10 = scmp.ge.s32.totalorder %s24_s29, 4   ;;  %s1980_s25 = smov %s1637_s26 }
 0x6b8   : > { %s1981_s26 = smov %s1756_s14  ;;  %s1982_s27 = smov %s1645_s28 }
 0x6b9   : > { %s1983_s28 = smov %s1985_s9  ;;  %23 = sbr.rel (!%p21_p10) target bundleno = 6 (0x6), region = 105 }
 0x6c0   :  { %1222 = vsyncpa [#allocation3], 1 }
 0x6c1   :  { %1224 = vsyncpa [#allocation3 + $0x1], 1 }
 0x6c2   :  { %1225 = vsyncpa [#allocation5], 1 }
 0x6c3   :  { %1227 = vsyncpa [#allocation5 + $0x1], 1 }

</bundles_post_ra>
